<compile_context>
chip_gen: v7x
topology: tpu7x:2x2x1
jax: 0.10.0
libtpu: 0.0.40
codegen_flags: <defaults>
</compile_context>

<pallas_src>
import functools

import jax
import jax.numpy as jnp
from jax.experimental import pallas as pl
from jax.experimental.pallas import tpu as pltpu


def _round_up(a: int, b: int) -> int:
    return ((a + b - 1) // b) * b


def _sublane_multiple(dtype) -> int:
    # packed sublane rows of one vreg: 8 for 4-byte, 16 for 2-byte, 32 for 1-byte
    return max(8, 32 // jnp.dtype(dtype).itemsize)


def _mse_sum_kernel(x_ref, y_ref, part_ref, *, m, n, tm, tn, need_mask):
    i = pl.program_id(0)          # row-block index ("parallel")
    j = pl.program_id(1)          # col-block index (reduction, "arbitrary")

    @pl.when(j == 0)
    def _():
        part_ref[...] = jnp.zeros_like(part_ref)

    # Cast to f32 after the (possibly narrower) DMA; accumulate in f32.
    xv = x_ref[...].astype(jnp.float32)
    yv = y_ref[...].astype(jnp.float32)
    d = xv - yv
    sq = d * d

    if need_mask:
        # Zero out the ragged-edge padding so it never contributes to the sum.
        rows = i * tm + jax.lax.broadcasted_iota(jnp.int32, (tm, tn), 0)
        cols = j * tn + jax.lax.broadcasted_iota(jnp.int32, (tm, tn), 1)
        sq = jnp.where((rows < m) & (cols < n), sq, 0.0)

    # Per-block partial sum, deposited at position (0, 0) of this row-block's
    # resident (8, 128) output tile (all other positions stay zero).
    block_sum = jnp.sum(sq, keepdims=True)                      # (1, 1) f32
    r8 = jax.lax.broadcasted_iota(jnp.int32, (8, 128), 0)
    c128 = jax.lax.broadcasted_iota(jnp.int32, (8, 128), 1)
    part_ref[...] += jnp.where((r8 == 0) & (c128 == 0), block_sum, 0.0)


def mse_loss_sum(x, y, *, tile_rows=512, tile_cols=1024):
    """sum((x - y)**2) over a 2-D pair of (possibly different-dtype) arrays."""
    if x.ndim != 2 or y.ndim != 2 or x.shape != y.shape:
        raise ValueError("expected two 2-D arrays of identical shape")
    M, N = x.shape

    # TODO(synk): TPU has no float64; the f64 operand of the PyTorch module is
    # represented in f32 (result matches the f64 reference to f32 tolerance).
    if x.dtype == jnp.float64:
        x = x.astype(jnp.float32)
    if y.dtype == jnp.float64:
        y = y.astype(jnp.float32)

    # Clamp the tile to the (aligned) array extent; keep (sublane, 128) alignment.
    row_align = max(_sublane_multiple(x.dtype), _sublane_multiple(y.dtype))
    tm = min(tile_rows, _round_up(M, row_align))
    tn = min(tile_cols, _round_up(N, 128))

    grid = (pl.cdiv(M, tm), pl.cdiv(N, tn))
    need_mask = (M % tm != 0) or (N % tn != 0)

    kernel = functools.partial(
        _mse_sum_kernel, m=M, n=N, tm=tm, tn=tn, need_mask=need_mask
    )

    in_spec = pl.BlockSpec((tm, tn), lambda i, j: (i, j))
    partials = pl.pallas_call(
        kernel,
        out_shape=jax.ShapeDtypeStruct((grid[0] * 8, 128), jnp.float32),
        grid_spec=pltpu.PrefetchScalarGridSpec(
            num_scalar_prefetch=0,
            grid=grid,
            in_specs=[in_spec, in_spec],
            out_specs=pl.BlockSpec((8, 128), lambda i, j: (i, 0)),
        ),
        compiler_params=pltpu.CompilerParams(
            dimension_semantics=("parallel", "arbitrary")
        ),
    )(x, y)

    # Tiny finishing reduction over grid_rows * 8 * 128 values (almost all zero).
    return jnp.sum(partials)


if __name__ == "__main__":
    key = jax.random.PRNGKey(0)
    kx, ky, ka, kb = jax.random.split(key, 4)

    # Module spec: x float32, y float64 ([-1, -1] dynamic shapes).  The f64
    # operand is carried as f32 on TPU (no f64 support).
    M, N = 16, 256
    x = jax.random.normal(kx, (M, N), dtype=jnp.float32)
    y = jax.random.normal(ky, (M, N), dtype=jnp.float32)  # float64 stand-in

    out = mse_loss_sum(x, y)
    jax.block_until_ready(out)
    ref = jnp.sum((x - y) ** 2)
    assert out.shape == () and out.dtype == jnp.float32
    assert jnp.allclose(out, ref, rtol=1e-5, atol=1e-3), (out, ref)

    # Exercise the mixed-element-type (in-kernel cast) and ragged-edge (mask)
    # paths with a small non-tile-aligned shape.
    M2, N2 = 20, 200
    a = jax.random.normal(ka, (M2, N2), dtype=jnp.float32)
    b = jax.random.normal(kb, (M2, N2), dtype=jnp.float32).astype(jnp.bfloat16)
    out2 = mse_loss_sum(a, b)
    jax.block_until_ready(out2)
    ref2 = jnp.sum((a - b.astype(jnp.float32)) ** 2)
    assert jnp.allclose(out2, ref2, rtol=1e-4, atol=1e-3), (out2, ref2)

    print("KERNEL_OK")
</pallas_src>

<mosaic_0001>
module attributes {stable_mosaic.version = 11 : i64} {
  func.func @_mse_sum_kernel(%arg0: i32, %arg1: i32, %arg2: memref<16x256xf32, #tpu.memory_space<vmem>>, %arg3: memref<16x256xf32, #tpu.memory_space<vmem>>, %arg4: memref<8x128xf32, #tpu.memory_space<vmem>>) attributes {dimension_semantics = [#tpu.dimension_semantics<parallel>, #tpu.dimension_semantics<arbitrary>], iteration_bounds = array<i64: 1, 1>, scalar_prefetch = 0 : i64, scratch_operands = 0 : i64, tpu.core_type = #tpu.core_type<tc>, window_params = [{transform_indices = @transform_0, window_bounds = array<i64: 16, 256>}, {transform_indices = @transform_1, window_bounds = array<i64: 16, 256>}, {transform_indices = @transform_2, window_bounds = array<i64: 8, 128>}]} {
    %c0_i32 = arith.constant 0 : i32
    %0 = arith.cmpi eq, %arg1, %c0_i32 : i32
    %1 = arith.extui %0 : i1 to i32
    %c0_i32_0 = arith.constant 0 : i32
    %2 = arith.cmpi ne, %1, %c0_i32_0 : i32
    scf.if %2 {
      %cst_11 = arith.constant 0.000000e+00 : f32
      %26 = vector.broadcast %cst_11 : f32 to vector<8x128xf32>
      %c0_12 = arith.constant 0 : index
      %c0_13 = arith.constant 0 : index
      %27 = vector.load %arg4[%c0_12, %c0_13] : memref<8x128xf32, #tpu.memory_space<vmem>>, vector<8x128xf32>
      tpu.vector_store %arg4[%c0_12, %c0_13], %26 {strides = array<i32>} : memref<8x128xf32, #tpu.memory_space<vmem>>, vector<8x128xf32>,
    } else {
    }
    %c0 = arith.constant 0 : index
    %c0_1 = arith.constant 0 : index
    %3 = vector.load %arg2[%c0, %c0_1] : memref<16x256xf32, #tpu.memory_space<vmem>>, vector<16x256xf32>
    %c0_2 = arith.constant 0 : index
    %c0_3 = arith.constant 0 : index
    %4 = vector.load %arg3[%c0_2, %c0_3] : memref<16x256xf32, #tpu.memory_space<vmem>>, vector<16x256xf32>
    %5 = arith.subf %3, %4 : vector<16x256xf32>
    %6 = arith.mulf %5, %5 : vector<16x256xf32>
    %7 = vector.shape_cast %6 : vector<16x256xf32> to vector<1x16x256xf32>
    %cst = arith.constant dense<0.000000e+00> : vector<1xf32>
    %8 = vector.multi_reduction <add>, %7, %cst [1, 2] : vector<1x16x256xf32> to vector<1xf32>
    %9 = vector.shape_cast %8 : vector<1xf32> to vector<1x1x1xf32>
    %10 = vector.extract %9[0, 0, 0] : f32 from vector<1x1x1xf32>
    %11 = vector.broadcast %10 : f32 to vector<1x1xf32>
    %12 = tpu.iota {dimensions = array<i32: 0>} : vector<8x128xi32>
    %13 = tpu.iota {dimensions = array<i32: 1>} : vector<8x128xi32>
    %c0_4 = arith.constant 0 : index
    %c0_5 = arith.constant 0 : index
    %14 = vector.load %arg4[%c0_4, %c0_5] : memref<8x128xf32, #tpu.memory_space<vmem>>, vector<8x128xf32>
    %c0_i32_6 = arith.constant 0 : i32
    %15 = vector.broadcast %c0_i32_6 : i32 to vector<8x128xi32>
    %16 = arith.cmpi eq, %12, %15 : vector<8x128xi32>
    %c0_i32_7 = arith.constant 0 : i32
    %17 = vector.broadcast %c0_i32_7 : i32 to vector<8x128xi32>
    %18 = arith.cmpi eq, %13, %17 : vector<8x128xi32>
    %19 = arith.andi %16, %18 : vector<8x128xi1>
    %cst_8 = arith.constant 0.000000e+00 : f32
    %20 = vector.shape_cast %11 : vector<1x1xf32> to vector<1x1xf32>
    %21 = vector.broadcast %20 : vector<1x1xf32> to vector<8x128xf32>
    %22 = vector.broadcast %cst_8 : f32 to vector<8x128xf32>
    %23 = arith.select %19, %21, %22 : vector<8x128xi1>, vector<8x128xf32>
    %24 = arith.addf %14, %23 : vector<8x128xf32>
    %c0_9 = arith.constant 0 : index
    %c0_10 = arith.constant 0 : index
    %25 = vector.load %arg4[%c0_9, %c0_10] : memref<8x128xf32, #tpu.memory_space<vmem>>, vector<8x128xf32>
    tpu.vector_store %arg4[%c0_9, %c0_10], %24 {strides = array<i32>} : memref<8x128xf32, #tpu.memory_space<vmem>>, vector<8x128xf32>,
    return
  }
  func.func @transform_0(%arg0: i32, %arg1: i32) -> (i32, i32) {
    %c0_i32 = arith.constant 0 : i32
    return %arg0, %arg1 : i32, i32
  }
  func.func @transform_1(%arg0: i32, %arg1: i32) -> (i32, i32) {
    %c0_i32 = arith.constant 0 : i32
    return %arg0, %arg1 : i32, i32
  }
  func.func @transform_2(%arg0: i32, %arg1: i32) -> (i32, i32) {
    %c0_i32 = arith.constant 0 : i32
    %c0_i32_0 = arith.constant 0 : i32
    return %arg0, %c0_i32 : i32, i32
  }
}

</mosaic_0001>

<bundles_post_ra>
// kernel: tpu_custom_call.1
= control target key start
LH: loop header
LB: loop body
LE: loop exit
PB: predicated region body
PF: predicated region fallthrough
CT: control target
= control target key end

     0   :  { %7 = vsyncpa [#allocation3], 0  ;;  %s237_s0 = inlined_call_operand.hbm [shape: f32[16,256], index: 0, kind: input, shape index: {}]   ;;  %s238_s1 = inlined_call_operand.hbm [shape: f32[16,256], index: 1, kind: input, shape index: {}]   ;;  %s239_s2 = inlined_call_operand.hbm [shape: f32[8,128], index: 2, kind: output, shape index: {}]  }
   0x1   :  { %8 = vsyncpa [#allocation6], 0 }
   0x2   :  { %9 = vsyncpa [#allocation4], 0  ;;  %s181_s9 = smov [#allocation2]   ;;  %s109_s13 = scalar_lea.hbm %s237_s0, 512 }
   0x3   :  { %s15_s10 = sshll.u32 %s181_s9, 4  ;;  %p110_p0 = scmp.ne.s32.totalorder %s237_s0, %s109_s13  ;;  %s16_s10 = int_to_ptr.vmem [resolvable:$true] %s15_s10 }
   0x4   :  { %p113_p1 = scmp.lt.u32.totalorder %s109_s13, %s237_s0 }
   0x6   :  { %p115_p2 = pnand %p113_p1, %p110_p0 }
   0x8   :  { %118 = shalt.err (!%p115_p2)
}
   0x9   :  { %s119_s18 = scalar_lea.vmem %s16_s10, 512  ;;  %p124_p4 = scmp.lt.s32.totalorder %s16_s10, %s16_s10 }
   0xa   :  { %p120_p3 = scmp.ne.s32.totalorder %s16_s10, %s119_s18  ;;  %p125_p5 = scmp.lt.s32.totalorder %s119_s18, %s119_s18 }
   0xc   :  { %p126_p6 = por %p125_p5, %p124_p4 }
   0xe   :  { %p127_p7 = pnand %p126_p6, %p120_p3 }
  0x10   :  { %130 = shalt.err (!%p127_p7)
}
  0x11   :  { %s182_s19 = smov 256   ;;  %s183_s20 = smov 16  }
  0x12   :  { %21 = dma.hbm_to_vmem [thread:$0]  %s237_s0, 512, %s16_s10, [#allocation3], %s182_s19, %s182_s19, %s183_s20  }
  0x13   :  { %s184_s23 = smov [#allocation5]   ;;  %s131_s27 = scalar_lea.hbm %s238_s1, 512 }
  0x14   :  { %s27_s24 = sshll.u32 %s184_s23, 4  ;;  %p132_p8 = scmp.ne.s32.totalorder %s238_s1, %s131_s27  ;;  %s28_s24 = int_to_ptr.vmem [resolvable:$true] %s27_s24 }
  0x15   :  { %p135_p9 = scmp.lt.u32.totalorder %s131_s27, %s238_s1 }
  0x17   :  { %p137_p10 = pnand %p135_p9, %p132_p8 }
  0x19   :  { %140 = shalt.err (!%p137_p10)
}
  0x1a   :  { %s141_s4 = scalar_lea.vmem %s28_s24, 512  ;;  %p146_p12 = scmp.lt.s32.totalorder %s28_s24, %s28_s24 }
  0x1b   :  { %p142_p11 = scmp.ne.s32.totalorder %s28_s24, %s141_s4  ;;  %p147_p13 = scmp.lt.s32.totalorder %s141_s4, %s141_s4 }
  0x1d   :  { %p148_p0 = por %p147_p13, %p146_p12 }
  0x1f   :  { %p149_p1 = pnand %p148_p0, %p142_p11 }
  0x21   :  { %152 = shalt.err (!%p149_p1)
}
  0x22   :  { %33 = dma.hbm_to_vmem [thread:$0]  %s238_s1, 512, %s28_s24, [#allocation6], %s182_s19, %s182_s19, %s183_s20  }
  0x23   :  { %175 = dma.done.wait [#allocation3], 512  }
  0x24   :  { %176 = vsyncadd [#allocation3], 4294966784 }
  0x25   :  { %177 = dma.done.wait [#allocation6], 512  }
  0x26   :  { %178 = vsyncadd [#allocation6], 4294966784  ;;  %v45_v0 = vld [vmem:[#allocation2] sm:$0xff]  ;;  %v46_v1 = vld [vmem:[#allocation2 + $0x8] sm:$0xff]  ;;  %v73_v26 = vlaneseq  ;;  %s185_s6 = smov [#allocation7]  }
  0x27   :  { %v47_v2 = vld [vmem:[#allocation2 + $0x10] sm:$0xff]  ;;  %v48_v3 = vld [vmem:[#allocation2 + $0x18] sm:$0xff]  ;;  %v49_v4 = vld [vmem:[#allocation5] sm:$0xff]  ;;  %s91_s7 = sshll.u32 %s185_s6, 4  ;;  %s92_s7 = int_to_ptr.vmem [resolvable:$true] %s91_s7 }
  0x28   :  { %v50_v5 = vld [vmem:[#allocation5 + $0x8] sm:$0xff]  ;;  %v51_v6 = vld [vmem:[#allocation5 + $0x10] sm:$0xff]  ;;  %v52_v7 = vld [vmem:[#allocation5 + $0x18] sm:$0xff]  ;;  %v53_v8 = vsub.f32 %v45_v0, %v49_v4  ;;  %v74_v27 = vshrl.u32 %v73_v26, 7  ;;  %v76_v28 = vand.u32 127, %v73_v26  ;;  %s153_s8 = scalar_lea.vmem %s92_s7, 128  ;;  %p158_p3 = scmp.lt.s32.totalorder %s92_s7, %s92_s7 }
  0x29   :  { %v54_v9 = vsub.f32 %v46_v1, %v50_v5  ;;  %v55_v10 = vsub.f32 %v47_v2, %v51_v6  ;;  %v56_v11 = vsub.f32 %v48_v3, %v52_v7  ;;  %p154_p2 = scmp.ne.s32.totalorder %s92_s7, %s153_s8  ;;  %p159_p4 = scmp.lt.s32.totalorder %s153_s8, %s153_s8 }
  0x2a   :  { %v57_v12 = vmul.f32 %v53_v8, %v53_v8  ;;  %vm78_vm0 = vcmp.eq.s32.totalorder %v74_v27, 0  ;;  %vm79_vm1 = vcmp.eq.s32.totalorder %v76_v28, 0 }
  0x2b   :  { %v58_v13 = vmul.f32 %v54_v9, %v54_v9  ;;  %v59_v14 = vmul.f32 %v55_v10, %v55_v10  ;;  %v60_v15 = vmul.f32 %v56_v11, %v56_v11  ;;  %vm80_vm2 = vmand %vm78_vm0, %vm79_vm1  ;;  %p160_p5 = por %p159_p4, %p158_p3 }
  0x2d   :  { %v61_v16 = vadd.f32 %v58_v13, %v57_v12  ;;  %p161_p6 = pnand %p160_p5, %p154_p2 }
  0x2f   :  { %v62_v17 = vadd.f32 %v61_v16, %v59_v14 }
  0x31   :  { %v63_v18 = vadd.f32 %v62_v17, %v60_v15 }
  0x33   :  { %64 = vadd.xlane.f32.xlu0 %v63_v18 }
  0xc0   :  { %v65_v19 = vpop.xlane.xlu0 %64 }
  0xc1   :  { %v66_v20 = vrot.slane %v65_v19, 4 }
  0xc3   :  { %v67_v21 = vadd.f32 %v66_v20, %v65_v19 }
  0xc5   :  { %v68_v22 = vrot.slane %v67_v21, 2 }
  0xc7   :  { %v69_v23 = vadd.f32 %v68_v22, %v67_v21 }
  0xc9   :  { %v70_v24 = vrot.slane %v69_v23, 1 }
  0xcb   :  { %v71_v25 = vadd.f32 %v70_v24, %v69_v23 }
  0xcd   :  { %101 = vpush %v71_v25 }
  0xfe   :  { %s102_s1 = spop %101 }
  0xff   :  { %v81_v29 = vstv %s102_s1 }
 0x100   :  { %v82_v30 = vsel %vm80_vm2, %v81_v29, 0.0 }
 0x101   :  { %84 = vst [vmem:[#allocation7] sm:$0xff] %v82_v30 }
 0x102   :  { %164 = shalt.err (!%p161_p6)
}
 0x103   :  { %s165_s11 = scalar_lea.hbm %s239_s2, 128 }
 0x104   :  { %p166_p7 = scmp.ne.s32.totalorder %s239_s2, %s165_s11  ;;  %p169_p8 = scmp.lt.u32.totalorder %s165_s11, %s239_s2 }
 0x106   :  { %p171_p9 = pnand %p169_p8, %p166_p7 }
 0x108   :  { %174 = shalt.err (!%p171_p9)
}
 0x109   :  { %94 = dma.vmem_to_hbm [thread:$0]  %s92_s7, 128, %s239_s2, [#allocation4]  }
 0x10a   :  { %179 = dma.done.wait [#allocation4], 128  }
 0x10b   :  { %180 = vsyncadd [#allocation4], 4294967168 }
 0x10c   :  { %98 = vsyncpa [#allocation3], 1 }
 0x10d   :  { %99 = vsyncpa [#allocation6], 1 }
 0x10e   :  { %100 = vsyncpa [#allocation4], 1 }

</bundles_post_ra>
